<compile_context>
chip_gen: v7x
topology: tpu7x:2x2x1
jax: 0.10.0
libtpu: 0.0.40
codegen_flags: <defaults>
</compile_context>

<pallas_src>
import functools

import jax
import jax.numpy as jnp
from jax.experimental import pallas as pl
from jax.experimental.pallas import tpu as pltpu

LN_EPS = 1e-5  # nn.LayerNorm default


def _round_up(n, m):
    return (n + m - 1) // m * m


def ffn_kernel(x_ref, w1_ref, b1_ref, w2_ref, b2_ref, g_ref, beta_ref,
               o_ref, y_acc_ref):
    f = pl.program_id(1)

    @pl.when(f == 0)
    def _():
        y_acc_ref[...] = jnp.zeros_like(y_acc_ref)

    # Matmuls in the (possibly bf16) compute dtype, f32 accumulation on the MXU.
    x = x_ref[...]                                                  # (TM, d_model)
    h = jnp.dot(x, w1_ref[...], preferred_element_type=jnp.float32)  # (TM, ft) f32
    h = jnp.maximum(h + b1_ref[...], 0.0).astype(w2_ref.dtype)       # ReLU, back to compute dtype
    y_acc_ref[...] += jnp.dot(h, w2_ref[...], preferred_element_type=jnp.float32)

    # TODO(synk): dropout is identity in eval mode; training-mode dropout
    # (pltpu.prng_random_bits mask) intentionally omitted for determinism.

    @pl.when(f == pl.num_programs(1) - 1)
    def _():
        # residual + LayerNorm (f32)
        z = y_acc_ref[...] + b2_ref[...] + x.astype(jnp.float32)
        mean = jnp.mean(z, axis=-1, keepdims=True)
        var = jnp.mean((z - mean) * (z - mean), axis=-1, keepdims=True)
        zn = (z - mean) * jax.lax.rsqrt(var + LN_EPS)
        o_ref[...] = (zn * g_ref[...] + beta_ref[...]).astype(o_ref.dtype)


@functools.partial(jax.jit,
                   static_argnames=("row_tile", "ff_tile", "compute_dtype"))
def position_wise_ffn(x, w1, b1, w2, b2, gamma, beta, *,
                      row_tile=256, ff_tile=512, compute_dtype=None):
    B, Q, d_model = x.shape
    d_ff = w1.shape[1]
    cdt = jnp.dtype(compute_dtype) if compute_dtype is not None else x.dtype
    csz = cdt.itemsize

    # --- row tiling: pad B*Q rows to a multiple of the row tile (mult of 8) ---
    rows = B * Q
    rt = max(8, min(row_tile, _round_up(rows, 8)))
    rt = _round_up(rt, 8)
    rows_p = _round_up(rows, rt)

    # --- d_ff tiling: pad d_ff so padded W1 cols / W2 rows / b1 are exact zeros
    #     (ReLU(0)=0 -> padded columns contribute nothing) ---
    d_ff_p = _round_up(d_ff, 128)
    ft = ff_tile
    if d_ff_p <= ft:
        ft = d_ff_p
    else:
        ft = _round_up(ft, 128)
        d_ff_p = _round_up(d_ff_p, ft)

    x2 = x.reshape(rows, d_model)
    if rows_p != rows:
        x2 = jnp.pad(x2, ((0, rows_p - rows), (0, 0)))
    if d_ff_p != d_ff:
        w1 = jnp.pad(w1, ((0, 0), (0, d_ff_p - d_ff)))
        b1 = jnp.pad(b1, (0, d_ff_p - d_ff))
        w2 = jnp.pad(w2, ((0, d_ff_p - d_ff), (0, 0)))

    x2 = x2.astype(cdt)
    w1 = w1.astype(cdt)
    w2 = w2.astype(cdt)
    b1_2 = b1.astype(jnp.float32).reshape(1, d_ff_p)
    b2_2 = b2.astype(jnp.float32).reshape(1, d_model)
    g_2 = gamma.astype(jnp.float32).reshape(1, d_model)
    be_2 = beta.astype(jnp.float32).reshape(1, d_model)

    grid = (rows_p // rt, d_ff_p // ft)

    # Scheduler hint for XLA around the custom call.
    cost = pl.CostEstimate(
        flops=int(4 * rows * d_model * d_ff),          # two matmuls
        transcendentals=int(rows_p),                   # one rsqrt per row
        bytes_accessed=int(x2.size * csz + rows_p * d_model * 4
                           + (w1.size + w2.size) * csz
                           + 4 * (d_ff_p + 3 * d_model)),
    )

    # VMEM budget: weight slabs (double-buffered) + x/out tiles + f32 scratch +
    # h intermediate, with headroom; raised above the v5e/v6e/v7x scoped
    # defaults and clamped to 64 MiB so it fits v7x physical VMEM.
    vmem_needed = (
        2 * (d_model * ft + ft * d_model) * csz   # W1 + W2 slabs, 2 buffers
        + 2 * 2 * rt * d_model * 4                # x + out tiles, 2 buffers
        + rt * d_model * 4                        # y accumulator scratch
        + rt * ft * 4                             # h intermediate
        + 8 * (d_ff_p + 3 * d_model)              # biases / LN params
    )
    vmem_limit = min(max(int(vmem_needed * 3 // 2) + (4 << 20), 32 << 20),
                     64 << 20)

    out = pl.pallas_call(
        ffn_kernel,
        out_shape=jax.ShapeDtypeStruct((rows_p, d_model), x.dtype),
        grid_spec=pltpu.PrefetchScalarGridSpec(
            num_scalar_prefetch=0,
            grid=grid,
            in_specs=[
                pl.BlockSpec((rt, d_model), lambda i, f: (i, 0)),   # x rows (resident across f)
                pl.BlockSpec((d_model, ft), lambda i, f: (0, f)),   # W1 column slab
                pl.BlockSpec((1, ft), lambda i, f: (0, f)),         # b1 slab
                pl.BlockSpec((ft, d_model), lambda i, f: (f, 0)),   # W2 row slab
                pl.BlockSpec((1, d_model), lambda i, f: (0, 0)),    # b2
                pl.BlockSpec((1, d_model), lambda i, f: (0, 0)),    # gamma
                pl.BlockSpec((1, d_model), lambda i, f: (0, 0)),    # beta
            ],
            out_specs=pl.BlockSpec((rt, d_model), lambda i, f: (i, 0)),
            scratch_shapes=[pltpu.VMEM((rt, d_model), jnp.float32)],
        ),
        compiler_params=pltpu.CompilerParams(
            dimension_semantics=("parallel", "arbitrary"),
            vmem_limit_bytes=vmem_limit),
        cost_estimate=cost,
    )(x2, w1, b1_2, w2, b2_2, g_2, be_2)

    return out[:rows].reshape(B, Q, d_model)


def init_params(key, d_model, d_ff, dtype=jnp.float32):
    """Deterministic init mimicking nn.Linear (uniform +-1/sqrt(fan_in))."""
    k1, k2, k3, k4 = jax.random.split(key, 4)
    lim1 = 1.0 / jnp.sqrt(d_model)
    lim2 = 1.0 / jnp.sqrt(d_ff)
    w1 = jax.random.uniform(k1, (d_model, d_ff), dtype, -lim1, lim1)
    b1 = jax.random.uniform(k2, (d_ff,), dtype, -lim1, lim1)
    w2 = jax.random.uniform(k3, (d_ff, d_model), dtype, -lim2, lim2)
    b2 = jax.random.uniform(k4, (d_model,), dtype, -lim2, lim2)
    gamma = jnp.ones((d_model,), dtype)   # nn.LayerNorm weight
    beta = jnp.zeros((d_model,), dtype)   # nn.LayerNorm bias
    return w1, b1, w2, b2, gamma, beta


def reference(x, w1, b1, w2, b2, gamma, beta):
    h = jnp.maximum(x @ w1 + b1, 0.0)
    y = h @ w2 + b2
    z = y + x
    mu = z.mean(-1, keepdims=True)
    var = ((z - mu) ** 2).mean(-1, keepdims=True)
    return (z - mu) / jnp.sqrt(var + LN_EPS) * gamma + beta


if __name__ == "__main__":
    # Small but lane-dense shapes: d_model multiple of 128 keeps output stores
    # as full (unmasked) vst; B*Q=16 rows collapse to a single 16-row tile.
    B, Q, d_model, d_ff = 2, 8, 128, 256
    key = jax.random.PRNGKey(0)
    kx, kp = jax.random.split(key)
    x = jax.random.normal(kx, (B, Q, d_model), jnp.float32)
    params = init_params(kp, d_model, d_ff)

    ref = reference(x, *params)

    # f32 path (no dtype promotion inside the kernel; tight tolerance)
    out = position_wise_ffn(x, *params)
    jax.block_until_ready(out)
    assert out.shape == (B, Q, d_model)
    assert jnp.allclose(out, ref, atol=1e-4, rtol=1e-4), "f32 mismatch vs reference"

    # bf16 operands + f32 accumulation path (MXU-native rate); looser tolerance.
    out_bf16 = position_wise_ffn(x, *params, compute_dtype=jnp.bfloat16)
    jax.block_until_ready(out_bf16)
    assert jnp.allclose(out_bf16, ref, atol=1e-1, rtol=1e-1), "bf16 mismatch vs reference"

    print("KERNEL_OK")
</pallas_src>

<mosaic_0001>
module attributes {stable_mosaic.version = 11 : i64} {
  func.func @ffn_kernel(%arg0: i32, %arg1: i32, %arg2: memref<16x128xf32, #tpu.memory_space<vmem>>, %arg3: memref<128x256xf32, #tpu.memory_space<vmem>>, %arg4: memref<1x256xf32, #tpu.memory_space<vmem>>, %arg5: memref<256x128xf32, #tpu.memory_space<vmem>>, %arg6: memref<1x128xf32, #tpu.memory_space<vmem>>, %arg7: memref<1x128xf32, #tpu.memory_space<vmem>>, %arg8: memref<1x128xf32, #tpu.memory_space<vmem>>, %arg9: memref<16x128xf32, #tpu.memory_space<vmem>>, %arg10: memref<16x128xf32, #tpu.memory_space<vmem>>) attributes {dimension_semantics = [#tpu.dimension_semantics<parallel>, #tpu.dimension_semantics<arbitrary>], iteration_bounds = array<i64: 1, 1>, scalar_prefetch = 0 : i64, scratch_operands = 1 : i64, tpu.core_type = #tpu.core_type<tc>, window_params = [{transform_indices = @transform_0, window_bounds = array<i64: 16, 128>}, {transform_indices = @transform_1, window_bounds = array<i64: 128, 256>}, {transform_indices = @transform_2, window_bounds = array<i64: 1, 256>}, {transform_indices = @transform_3, window_bounds = array<i64: 256, 128>}, {pipeline_mode = #tpu.pipeline_mode<synchronous>, transform_indices = @transform_4, window_bounds = array<i64: 1, 128>}, {pipeline_mode = #tpu.pipeline_mode<synchronous>, transform_indices = @transform_5, window_bounds = array<i64: 1, 128>}, {pipeline_mode = #tpu.pipeline_mode<synchronous>, transform_indices = @transform_6, window_bounds = array<i64: 1, 128>}, {transform_indices = @transform_7, window_bounds = array<i64: 16, 128>}]} {
    %c0_i32 = arith.constant 0 : i32
    %0 = arith.cmpi eq, %arg1, %c0_i32 : i32
    %1 = arith.extui %0 : i1 to i32
    %c0_i32_0 = arith.constant 0 : i32
    %2 = arith.cmpi ne, %1, %c0_i32_0 : i32
    scf.if %2 {
      %cst_16 = arith.constant 0.000000e+00 : f32
      %19 = vector.broadcast %cst_16 : f32 to vector<16x128xf32>
      %c0_17 = arith.constant 0 : index
      %c0_18 = arith.constant 0 : index
      %20 = vector.load %arg10[%c0_17, %c0_18] : memref<16x128xf32, #tpu.memory_space<vmem>>, vector<16x128xf32>
      tpu.vector_store %arg10[%c0_17, %c0_18], %19 {strides = array<i32>} : memref<16x128xf32, #tpu.memory_space<vmem>>, vector<16x128xf32>,
    } else {
    }
    %c0 = arith.constant 0 : index
    %c0_1 = arith.constant 0 : index
    %3 = vector.load %arg2[%c0, %c0_1] : memref<16x128xf32, #tpu.memory_space<vmem>>, vector<16x128xf32>
    %c0_2 = arith.constant 0 : index
    %c0_3 = arith.constant 0 : index
    %4 = vector.load %arg3[%c0_2, %c0_3] : memref<128x256xf32, #tpu.memory_space<vmem>>, vector<128x256xf32>
    %cst = arith.constant dense<0.000000e+00> : vector<16x256xf32>
    %5 = tpu.matmul %3, %4, %cst {dimension_numbers = #tpu.dot_dimension_numbers<[1], [0], [0], [1], [0, 0, 1, 1], [], []>} : vector<16x128xf32>, vector<128x256xf32>, vector<16x256xf32> -> vector<16x256xf32>
    %c0_4 = arith.constant 0 : index
    %c0_5 = arith.constant 0 : index
    %6 = vector.load %arg4[%c0_4, %c0_5] : memref<1x256xf32, #tpu.memory_space<vmem>>, vector<1x256xf32>
    %7 = vector.broadcast %6 : vector<1x256xf32> to vector<16x256xf32>
    %8 = arith.addf %5, %7 : vector<16x256xf32>
    %cst_6 = arith.constant 0.000000e+00 : f32
    %9 = vector.broadcast %cst_6 : f32 to vector<16x256xf32>
    %10 = arith.maximumf %8, %9 : vector<16x256xf32>
    %c0_7 = arith.constant 0 : index
    %c0_8 = arith.constant 0 : index
    %11 = vector.load %arg10[%c0_7, %c0_8] : memref<16x128xf32, #tpu.memory_space<vmem>>, vector<16x128xf32>
    %c0_9 = arith.constant 0 : index
    %c0_10 = arith.constant 0 : index
    %12 = vector.load %arg5[%c0_9, %c0_10] : memref<256x128xf32, #tpu.memory_space<vmem>>, vector<256x128xf32>
    %cst_11 = arith.constant dense<0.000000e+00> : vector<16x128xf32>
    %13 = tpu.matmul %10, %12, %cst_11 {dimension_numbers = #tpu.dot_dimension_numbers<[1], [0], [0], [1], [0, 0, 1, 1], [], []>} : vector<16x256xf32>, vector<256x128xf32>, vector<16x128xf32> -> vector<16x128xf32>
    %14 = arith.addf %11, %13 : vector<16x128xf32>
    %c0_12 = arith.constant 0 : index
    %c0_13 = arith.constant 0 : index
    %15 = vector.load %arg10[%c0_12, %c0_13] : memref<16x128xf32, #tpu.memory_space<vmem>>, vector<16x128xf32>
    tpu.vector_store %arg10[%c0_12, %c0_13], %14 {strides = array<i32>} : memref<16x128xf32, #tpu.memory_space<vmem>>, vector<16x128xf32>,
    %c0_i32_14 = arith.constant 0 : i32
    %16 = arith.cmpi eq, %arg1, %c0_i32_14 : i32
    %17 = arith.extui %16 : i1 to i32
    %c0_i32_15 = arith.constant 0 : i32
    %18 = arith.cmpi ne, %17, %c0_i32_15 : i32
    scf.if %18 {
      %c0_16 = arith.constant 0 : index
      %c0_17 = arith.constant 0 : index
      %19 = vector.load %arg10[%c0_16, %c0_17] : memref<16x128xf32, #tpu.memory_space<vmem>>, vector<16x128xf32>
      %c0_18 = arith.constant 0 : index
      %c0_19 = arith.constant 0 : index
      %20 = vector.load %arg6[%c0_18, %c0_19] : memref<1x128xf32, #tpu.memory_space<vmem>>, vector<1x128xf32>
      %21 = vector.broadcast %20 : vector<1x128xf32> to vector<16x128xf32>
      %22 = arith.addf %19, %21 : vector<16x128xf32>
      %23 = arith.addf %22, %3 : vector<16x128xf32>
      %cst_20 = arith.constant dense<0.000000e+00> : vector<16xf32>
      %24 = vector.multi_reduction <add>, %23, %cst_20 [1] : vector<16x128xf32> to vector<16xf32>
      %25 = vector.shape_cast %24 : vector<16xf32> to vector<16x1xf32>
      %cst_21 = arith.constant 1.280000e+02 : f32
      %26 = vector.broadcast %cst_21 : f32 to vector<16x1xf32>
      %27 = arith.divf %25, %26 : vector<16x1xf32>
      %28 = vector.broadcast %27 : vector<16x1xf32> to vector<16x128xf32>
      %29 = arith.subf %23, %28 : vector<16x128xf32>
      %30 = vector.broadcast %27 : vector<16x1xf32> to vector<16x128xf32>
      %31 = arith.subf %23, %30 : vector<16x128xf32>
      %32 = arith.mulf %29, %31 : vector<16x128xf32>
      %cst_22 = arith.constant dense<0.000000e+00> : vector<16xf32>
      %33 = vector.multi_reduction <add>, %32, %cst_22 [1] : vector<16x128xf32> to vector<16xf32>
      %34 = vector.shape_cast %33 : vector<16xf32> to vector<16x1xf32>
      %cst_23 = arith.constant 1.280000e+02 : f32
      %35 = vector.broadcast %cst_23 : f32 to vector<16x1xf32>
      %36 = arith.divf %34, %35 : vector<16x1xf32>
      %37 = vector.broadcast %27 : vector<16x1xf32> to vector<16x128xf32>
      %38 = arith.subf %23, %37 : vector<16x128xf32>
      %cst_24 = arith.constant 9.99999974E-6 : f32
      %39 = vector.broadcast %cst_24 : f32 to vector<16x1xf32>
      %40 = arith.addf %36, %39 : vector<16x1xf32>
      %41 = math.rsqrt %40 : vector<16x1xf32>
      %42 = vector.broadcast %41 : vector<16x1xf32> to vector<16x128xf32>
      %43 = arith.mulf %38, %42 : vector<16x128xf32>
      %c0_25 = arith.constant 0 : index
      %c0_26 = arith.constant 0 : index
      %44 = vector.load %arg7[%c0_25, %c0_26] : memref<1x128xf32, #tpu.memory_space<vmem>>, vector<1x128xf32>
      %45 = vector.broadcast %44 : vector<1x128xf32> to vector<16x128xf32>
      %46 = arith.mulf %43, %45 : vector<16x128xf32>
      %c0_27 = arith.constant 0 : index
      %c0_28 = arith.constant 0 : index
      %47 = vector.load %arg8[%c0_27, %c0_28] : memref<1x128xf32, #tpu.memory_space<vmem>>, vector<1x128xf32>
      %48 = vector.broadcast %47 : vector<1x128xf32> to vector<16x128xf32>
      %49 = arith.addf %46, %48 : vector<16x128xf32>
      %c0_29 = arith.constant 0 : index
      %c0_30 = arith.constant 0 : index
      %50 = vector.load %arg9[%c0_29, %c0_30] : memref<16x128xf32, #tpu.memory_space<vmem>>, vector<16x128xf32>
      tpu.vector_store %arg9[%c0_29, %c0_30], %49 {strides = array<i32>} : memref<16x128xf32, #tpu.memory_space<vmem>>, vector<16x128xf32>,
    } else {
    }
    return
  }
  func.func @transform_0(%arg0: i32, %arg1: i32) -> (i32, i32) {
    %c0_i32 = arith.constant 0 : i32
    %c0_i32_0 = arith.constant 0 : i32
    return %arg0, %c0_i32 : i32, i32
  }
  func.func @transform_1(%arg0: i32, %arg1: i32) -> (i32, i32) {
    %c0_i32 = arith.constant 0 : i32
    %c0_i32_0 = arith.constant 0 : i32
    return %c0_i32, %arg1 : i32, i32
  }
  func.func @transform_2(%arg0: i32, %arg1: i32) -> (i32, i32) {
    %c0_i32 = arith.constant 0 : i32
    %c0_i32_0 = arith.constant 0 : i32
    return %c0_i32, %arg1 : i32, i32
  }
  func.func @transform_3(%arg0: i32, %arg1: i32) -> (i32, i32) {
    %c0_i32 = arith.constant 0 : i32
    %c0_i32_0 = arith.constant 0 : i32
    return %arg1, %c0_i32 : i32, i32
  }
  func.func @transform_4(%arg0: i32, %arg1: i32) -> (i32, i32) {
    %c0_i32 = arith.constant 0 : i32
    %c0_i32_0 = arith.constant 0 : i32
    %c0_i32_1 = arith.constant 0 : i32
    return %c0_i32, %c0_i32_0 : i32, i32
  }
  func.func @transform_5(%arg0: i32, %arg1: i32) -> (i32, i32) {
    %c0_i32 = arith.constant 0 : i32
    %c0_i32_0 = arith.constant 0 : i32
    %c0_i32_1 = arith.constant 0 : i32
    return %c0_i32, %c0_i32_0 : i32, i32
  }
  func.func @transform_6(%arg0: i32, %arg1: i32) -> (i32, i32) {
    %c0_i32 = arith.constant 0 : i32
    %c0_i32_0 = arith.constant 0 : i32
    %c0_i32_1 = arith.constant 0 : i32
    return %c0_i32, %c0_i32_0 : i32, i32
  }
  func.func @transform_7(%arg0: i32, %arg1: i32) -> (i32, i32) {
    %c0_i32 = arith.constant 0 : i32
    %c0_i32_0 = arith.constant 0 : i32
    return %arg0, %c0_i32 : i32, i32
  }
}

</mosaic_0001>

<bundles_post_ra>
// kernel: position_wise_ffn.1
= control target key start
LH: loop header
LB: loop body
LE: loop exit
PB: predicated region body
PF: predicated region fallthrough
CT: control target
= control target key end

     0   :  { %12 = vsyncpa [#allocation4], 0  ;;  %s677_s0 = inlined_call_operand.vmem [shape: f32[16,128], index: 0, kind: input, shape index: {}]   ;;  %s678_s1 = inlined_call_operand.hbm [shape: f32[128,256], index: 1, kind: input, shape index: {}]   ;;  %s679_s2 = inlined_call_operand.vmem [shape: f32[1,256], index: 2, kind: input, shape index: {}]   ;;  %s680_s3 = inlined_call_operand.hbm [shape: f32[256,128], index: 3, kind: input, shape index: {}]   ;;  %s681_s4 = inlined_call_operand.vmem [shape: f32[1,128], index: 4, kind: input, shape index: {}]   ;;  %s682_s5 = inlined_call_operand.vmem [shape: f32[1,128], index: 5, kind: input, shape index: {}]   ;;  %s683_s6 = inlined_call_operand.vmem [shape: f32[1,128], index: 6, kind: input, shape index: {}]   ;;  %s684_s7 = inlined_call_operand.hbm [shape: f32[16,128], index: 7, kind: output, shape index: {}]  }
   0x1   :  { %13 = vsyncpa [#allocation7], 0 }
   0x2   :  { %14 = vsyncpa [#allocation5], 0  ;;  %s567_s24 = smov [#allocation3]   ;;  %s495_s28 = scalar_lea.hbm %s678_s1, 4096 }
   0x3   :  { %s22_s25 = sshll.u32 %s567_s24, 4  ;;  %p496_p0 = scmp.ne.s32.totalorder %s678_s1, %s495_s28  ;;  %s23_s25 = int_to_ptr.vmem [resolvable:$true] %s22_s25 }
   0x4   :  { %p499_p1 = scmp.lt.u32.totalorder %s495_s28, %s678_s1 }
   0x6   :  { %p501_p2 = pnand %p499_p1, %p496_p0 }
   0x8   :  { %504 = shalt.err (!%p501_p2)
}
   0x9   :  { %s505_s10 = scalar_lea.vmem %s23_s25, 4096  ;;  %p510_p4 = scmp.lt.s32.totalorder %s23_s25, %s23_s25 }
   0xa   :  { %p506_p3 = scmp.ne.s32.totalorder %s23_s25, %s505_s10  ;;  %p511_p5 = scmp.lt.s32.totalorder %s505_s10, %s505_s10 }
   0xc   :  { %p512_p6 = por %p511_p5, %p510_p4 }
   0xe   :  { %p513_p7 = pnand %p512_p6, %p506_p3 }
  0x10   :  { %516 = shalt.err (!%p513_p7)
}
  0x11   :  { %s568_s11 = smov 256   ;;  %s569_s12 = smov 16  }
  0x12   :  { %28 = dma.hbm_to_vmem [thread:$0]  %s678_s1, 4096, %s23_s25, [#allocation4], %s568_s11, %s568_s11, %s569_s12  }
  0x13   :  { %s570_s15 = smov [#allocation6]   ;;  %s517_s19 = scalar_lea.hbm %s680_s3, 4096 }
  0x14   :  { %s36_s16 = sshll.u32 %s570_s15, 4  ;;  %p518_p8 = scmp.ne.s32.totalorder %s680_s3, %s517_s19  ;;  %s37_s16 = int_to_ptr.vmem [resolvable:$true] %s36_s16 }
  0x15   :  { %p521_p9 = scmp.lt.u32.totalorder %s517_s19, %s680_s3 }
  0x17   :  { %p523_p10 = pnand %p521_p9, %p518_p8 }
  0x19   :  { %526 = shalt.err (!%p523_p10)
}
  0x1a   :  { %s527_s24 = scalar_lea.vmem %s37_s16, 4096  ;;  %p532_p12 = scmp.lt.s32.totalorder %s37_s16, %s37_s16 }
  0x1b   :  { %p528_p11 = scmp.ne.s32.totalorder %s37_s16, %s527_s24  ;;  %p533_p13 = scmp.lt.s32.totalorder %s527_s24, %s527_s24 }
  0x1d   :  { %p534_p0 = por %p533_p13, %p532_p12 }
  0x1f   :  { %p535_p1 = pnand %p534_p0, %p528_p11 }
  0x21   :  { %538 = shalt.err (!%p535_p1)
}
  0x22   :  { %s571_s1 = smov 128   ;;  %s572_s25 = smov 8  }
  0x23   :  { %42 = dma.hbm_to_vmem [thread:$0]  %s680_s3, 4096, %s37_s16, [#allocation7], %s571_s1, %s571_s1, %s572_s25  }
  0x24   :  { %561 = dma.done.wait [#allocation4], 4096  }
  0x25   :  { %562 = vsyncadd [#allocation4], 4294963200 }
  0x26   :  { %563 = dma.done.wait [#allocation7], 4096  }
  0x27   :  { %564 = vsyncadd [#allocation7], 4294963200  ;;  %v573_v0 = vmov 0.0   ;;  %v64_v1 = vld [vmem:[#allocation3 + $0x8] sm:$0xff]  ;;  %v66_v2 = vld [vmem:[#allocation3 + $0x18] sm:$0xff]  ;;  %s574_s13 = smov [#allocation8]  }
  0x28   :  { %171 = vmatprep.mubr.f32.mxu0 %v573_v0  ;;  %v63_v3 = vld [vmem:[#allocation3] sm:$0xff]  ;;  %v419_v4 = vpack.c.bf16 %v66_v2, %v64_v1  ;;  %v65_v5 = vld [vmem:[#allocation3 + $0x10] sm:$0xff]  ;;  %v68_v6 = vld [vmem:[#allocation3 + $0x28] sm:$0xff]  ;;  %s365_s14 = sshll.u32 %s574_s13, 4  ;;  %s366_s14 = int_to_ptr.vmem [resolvable:$true] %s365_s14 }
  0x29   :  { %v70_v7 = vld [vmem:[#allocation3 + $0x38] sm:$0xff]  ;;  %v421_v8 = vpack.c.bf16 %v65_v5, %v63_v3  ;;  %v67_v10 = vld [vmem:[#allocation3 + $0x20] sm:$0xff]  ;;  %v69_v11 = vld [vmem:[#allocation3 + $0x30] sm:$0xff]  ;;  %s539_s15 = scalar_lea.vmem %s366_s14, 256  ;;  %p544_p3 = scmp.lt.s32.totalorder %s366_s14, %s366_s14 }
  0x2a   :  { %v423_v9 = vpack.c.bf16 %v70_v7, %v68_v6  ;;  %v72_v12 = vld [vmem:[#allocation3 + $0x48] sm:$0xff]  ;;  %420 = vmatprep.subr.bf16.mxu0 %v419_v4  ;;  %v74_v13 = vld [vmem:[#allocation3 + $0x58] sm:$0xff]  ;;  %v425_v14 = vpack.c.bf16 %v69_v11, %v67_v10  ;;  %v71_v16 = vld [vmem:[#allocation3 + $0x40] sm:$0xff]  ;;  %p540_p2 = scmp.ne.s32.totalorder %s366_s14, %s539_s15  ;;  %p545_p4 = scmp.lt.s32.totalorder %s539_s15, %s539_s15 }
  0x2b   :  { %422 = vmatpush1.bf16.msra.mxu0 %v421_v8  ;;  %v427_v15 = vpack.c.bf16 %v74_v13, %v72_v12  ;;  %v73_v17 = vld [vmem:[#allocation3 + $0x50] sm:$0xff]  ;;  %v76_v18 = vld [vmem:[#allocation3 + $0x68] sm:$0xff]  ;;  %v78_v19 = vld [vmem:[#allocation3 + $0x78] sm:$0xff] }
  0x2c   :  { %424 = vmatprep.subr.bf16.mxu0 %v423_v9  ;;  %v429_v20 = vpack.c.bf16 %v73_v17, %v71_v16  ;;  %v431_v21 = vpack.c.bf16 %v78_v19, %v76_v18  ;;  %v75_v22 = vld [vmem:[#allocation3 + $0x60] sm:$0xff]  ;;  %v77_v23 = vld [vmem:[#allocation3 + $0x70] sm:$0xff]  ;;  %v80_v24 = vld [vmem:[#allocation3 + $0x88] sm:$0xff]  ;;  %p546_p5 = por %p545_p4, %p544_p3 }
  0x2d   :  { %v82_v25 = vld [vmem:[#allocation3 + $0x98] sm:$0xff]  ;;  %v79_v26 = vld [vmem:[#allocation3 + $0x80] sm:$0xff]  ;;  %v81_v27 = vld [vmem:[#allocation3 + $0x90] sm:$0xff]  ;;  %v433_v30 = vpack.c.bf16 %v77_v23, %v75_v22 }
  0x2e   :  { %v206_v28 = vld [vmem:[#allocation6 + $0x80] sm:$0xff]  ;;  %v207_v29 = vld [vmem:[#allocation6 + $0x88] sm:$0xff]  ;;  %v208_v35 = vld [vmem:[#allocation6 + $0x90] sm:$0xff]  ;;  %v435_v36 = vpack.c.bf16 %v82_v25, %v80_v24  ;;  %v437_v46 = vpack.c.bf16 %v81_v27, %v79_v26  ;;  %p547_p6 = pnand %p546_p5, %p540_p2 }
  0x2f   :  { %426 = vmatpush1.bf16.msra.mxu0 %v425_v14  ;;  %v84_v31 = vld [vmem:[#allocation3 + $0xa8] sm:$0xff]  ;;  %v451_v32 = vpack.c.bf16 %v207_v29, %v206_v28  ;;  %v190_v33 = vld [vmem:[#allocation6] sm:$0xff]  ;;  %v209_v38 = vld [vmem:[#allocation6 + $0x98] sm:$0xff] }
  0x30   :  { %428 = vmatprep.subr.bf16.mxu0 %v427_v15  ;;  %v191_v34 = vld [vmem:[#allocation6 + $0x8] sm:$0xff]  ;;  %v192_v39 = vld [vmem:[#allocation6 + $0x10] sm:$0xff]  ;;  %v193_v40 = vld [vmem:[#allocation6 + $0x18] sm:$0xff]  ;;  %v455_v42 = vpack.c.bf16 %v209_v38, %v208_v35 }
  0x31   :  { %v453_v37 = vpack.c.bf16 %v191_v34, %v190_v33  ;;  %v86_v41 = vld [vmem:[#allocation3 + $0xb8] sm:$0xff]  ;;  %452 = vmatprep.subr.bf16.mxu1 %v451_v32  ;;  %v210_v43 = vld [vmem:[#allocation6 + $0xa0] sm:$0xff]  ;;  %v211_v44 = vld [vmem:[#allocation6 + $0xa8] sm:$0xff]  ;;  %v457_v45 = vpack.c.bf16 %v193_v40, %v192_v39 }
  0x32   :  { %v83_v47 = vld [vmem:[#allocation3 + $0xa0] sm:$0xff]  ;;  %v459_v48 = vpack.c.bf16 %v211_v44, %v210_v43  ;;  %v195_v50 = vld [vmem:[#allocation6 + $0x28] sm:$0xff]  ;;  %v439_v51 = vpack.c.bf16 %v86_v41, %v84_v31  ;;  %v85_v52 = vld [vmem:[#allocation3 + $0xb0] sm:$0xff] }
  0x33   :  { %430 = vmatpush1.bf16.msra.mxu0 %v429_v20  ;;  %454 = vmatpush3.bf16.msra.mxu1 %v453_v37  ;;  %v194_v49 = vld [vmem:[#allocation6 + $0x20] sm:$0xff]  ;;  %v212_v53 = vld [vmem:[#allocation6 + $0xb0] sm:$0xff]  ;;  %v213_v54 = vld [vmem:[#allocation6 + $0xb8] sm:$0xff]  ;;  %v441_v58 = vpack.c.bf16 %v85_v52, %v83_v47 }
  0x34   :  { %432 = vmatprep.subr.bf16.mxu0 %v431_v21  ;;  %456 = vmatprep.subr.bf16.mxu1 %v455_v42  ;;  %v88_v55 = vld [vmem:[#allocation3 + $0xc8] sm:$0xff]  ;;  %v90_v56 = vld [vmem:[#allocation3 + $0xd8] sm:$0xff]  ;;  %v461_v57 = vpack.c.bf16 %v195_v50, %v194_v49  ;;  %v87_v59 = vld [vmem:[#allocation3 + $0xc0] sm:$0xff]  ;;  %v463_v60 = vpack.c.bf16 %v213_v54, %v212_v53 }
  0x35   :  { %v196_v61 = vld [vmem:[#allocation6 + $0x30] sm:$0xff]  ;;  %v197_v62 = vld [vmem:[#allocation6 + $0x38] sm:$0xff]  ;;  %v443_v63 = vpack.c.bf16 %v90_v56, %v88_v55  ;;  %v214_v2 = vld [vmem:[#allocation6 + $0xc0] sm:$0xff] }
  0x36   :  { %v89_v1 = vld [vmem:[#allocation3 + $0xd0] sm:$0xff]  ;;  %v215_v3 = vld [vmem:[#allocation6 + $0xc8] sm:$0xff]  ;;  %v94_v5 = vld [vmem:[#allocation3 + $0xf8] sm:$0xff]  ;;  %v465_v6 = vpack.c.bf16 %v197_v62, %v196_v61 }
  0x37   :  { %434 = vmatpush1.bf16.msra.mxu0 %v433_v30  ;;  %458 = vmatpush3.bf16.msra.mxu1 %v457_v45  ;;  %v92_v4 = vld [vmem:[#allocation3 + $0xe8] sm:$0xff]  ;;  %v445_v7 = vpack.c.bf16 %v89_v1, %v87_v59  ;;  %v91_v8 = vld [vmem:[#allocation3 + $0xe0] sm:$0xff]  ;;  %v467_v9 = vpack.c.bf16 %v215_v3, %v214_v2  ;;  %v93_v13 = vld [vmem:[#allocation3 + $0xf0] sm:$0xff] }
  0x38   :  { %436 = vmatprep.subr.bf16.mxu0 %v435_v36  ;;  %460 = vmatprep.subr.bf16.mxu1 %v459_v48  ;;  %v198_v10 = vld [vmem:[#allocation6 + $0x40] sm:$0xff]  ;;  %v199_v11 = vld [vmem:[#allocation6 + $0x48] sm:$0xff]  ;;  %v447_v12 = vpack.c.bf16 %v94_v5, %v92_v4  ;;  %v216_v14 = vld [vmem:[#allocation6 + $0xd0] sm:$0xff]  ;;  %v449_v17 = vpack.c.bf16 %v93_v13, %v91_v8  ;;  %v97_v36 = vlaneseq }
  0x39   :  { %v217_v15 = vld [vmem:[#allocation6 + $0xd8] sm:$0xff]  ;;  %v469_v16 = vpack.c.bf16 %v199_v11, %v198_v10  ;;  %v200_v19 = vld [vmem:[#allocation6 + $0x50] sm:$0xff]  ;;  %v218_v21 = vld [vmem:[#allocation6 + $0xe0] sm:$0xff] }
  0x3a   :  { %v471_v18 = vpack.c.bf16 %v217_v15, %v216_v14  ;;  %v201_v20 = vld [vmem:[#allocation6 + $0x58] sm:$0xff]  ;;  %v219_v22 = vld [vmem:[#allocation6 + $0xe8] sm:$0xff]  ;;  %v61_v24 = vld [vmem:[%s677_s0] sm:$0xff] }
  0x3b   :  { %438 = vmatpush1.bf16.msra.mxu0 %v437_v46  ;;  %462 = vmatpush3.bf16.msra.mxu1 %v461_v57  ;;  %v473_v23 = vpack.c.bf16 %v201_v20, %v200_v19  ;;  %v475_v25 = vpack.c.bf16 %v219_v22, %v218_v21  ;;  %v62_v26 = vld [vmem:[%s677_s0 + $0x8] sm:$0xff]  ;;  %v202_v27 = vld [vmem:[#allocation6 + $0x60] sm:$0xff]  ;;  %v220_v30 = vld [vmem:[#allocation6 + $0xf0] sm:$0xff] }
  0x3c   :  { %440 = vmatprep.subr.bf16.mxu0 %v439_v51  ;;  %464 = vmatprep.subr.bf16.mxu1 %v463_v60  ;;  %v203_v28 = vld [vmem:[#allocation6 + $0x68] sm:$0xff]  ;;  %v221_v31 = vld [vmem:[#allocation6 + $0xf8] sm:$0xff]  ;;  %v204_v33 = vld [vmem:[#allocation6 + $0x70] sm:$0xff] }
  0x3d   :  { %v477_v29 = vpack.c.bf16 %v203_v28, %v202_v27  ;;  %v479_v32 = vpack.c.bf16 %v221_v31, %v220_v30  ;;  %v205_v34 = vld [vmem:[#allocation6 + $0x78] sm:$0xff]  ;;  %v95_v38 = vld [vmem:[%s679_s2] sm:$0x3] }
  0x3e   :  { %v481_v35 = vpack.c.bf16 %v205_v34, %v204_v33  ;;  %v378_v56 = vld [vmem:[%s681_s4] ss:$0 sm:$0xff] }
  0x3f   :  { %442 = vmatpush1.bf16.msra.mxu0 %v441_v58  ;;  %466 = vmatpush3.bf16.msra.mxu1 %v465_v6  ;;  %v380_v19 = vld [vmem:[%s683_s6] ss:$0 sm:$0xff] }
  0x40   :  { %444 = vmatprep.subr.bf16.mxu0 %v443_v63  ;;  %468 = vmatprep.subr.bf16.mxu1 %v467_v9 }
  0x43   :  { %446 = vmatpush1.bf16.msra.mxu0 %v445_v7  ;;  %470 = vmatpush3.bf16.msra.mxu1 %v469_v16 }
  0x44   :  { %448 = vmatprep.subr.bf16.mxu0 %v447_v12  ;;  %472 = vmatprep.subr.bf16.mxu1 %v471_v18 }
  0x47   :  { %450 = vmatpush1.bf16.msra.mxu0 %v449_v17  ;;  %474 = vmatpush3.bf16.msra.mxu1 %v473_v23  ;;  %v379_v17 = vld [vmem:[%s682_s5] ss:$0 sm:$0xff] }
  0x48   :  { %476 = vmatprep.subr.bf16.mxu1 %v475_v25 }
  0x4a   :  { %172 = vmatmul.mubr.f32.vlgmr.msra.gmra.mrb[0].mxu0 %v61_v24 }
  0x4b   :  { %177 = vmatprep.mubr.f32.mxu0 %v573_v0  ;;  %478 = vmatpush3.bf16.msra.mxu1 %v477_v29  ;;  %v98_v0 = vshrl.u32 %v97_v36, 7 }
  0x4c   :  { %480 = vmatprep.subr.bf16.mxu1 %v479_v32 }
  0x4d   :  { %v99_v37 = vsub.s32 0, %v98_v0  ;;  %v103_v39 = vsub.s32 1, %v98_v0 }
  0x4e   :  { %178 = vmatmul.mubr.f32.gmra.mrb[2].mxu0 %v62_v26 }
  0x4f   :  { %482 = vmatpush3.bf16.msra.mxu1 %v481_v35  ;;  %v100_v40 = vrot.slane %v95_v38, %v99_v37  ;;  %v104_v41 = vrot.slane %v95_v38, %v103_v39 }
 0x11d   :  { %v173_v42 = vpop.f32.mrb[0].mxu0 }
 0x11e   :  { %v174_v43 = vadd.f32 %v173_v42, %v100_v40  ;;  %v175_v44 = vpop.f32.mrb[1].mxu0 }
 0x11f   :  { %v176_v45 = vadd.f32 %v175_v44, %v104_v41 }
 0x120   :  { %v184_v48 = vmax.f32 %v174_v43, 0.0 }
 0x121   :  { %v179_v46 = vpop.f32.mrb[2].mxu0  ;;  %v185_v47 = vmax.f32 %v176_v45, 0.0 }
 0x122   :  { %v180_v49 = vadd.f32 %v179_v46, %v100_v40  ;;  %v181_v50 = vpop.f32.mrb[3].mxu0 }
 0x123   :  { %v182_v51 = vadd.f32 %v181_v50, %v104_v41  ;;  %286 = vmatprep.mubr.f32.mxu1 %v185_v47 }
 0x124   :  { %287 = vmatmul.mubr.f32.vlgmr.msra.gmra.mrb[0].mxu1 %v184_v48  ;;  %v186_v53 = vmax.f32 %v180_v49, 0.0 }
 0x125   :  { %v187_v52 = vmax.f32 %v182_v51, 0.0 }
 0x127   :  { %291 = vmatprep.mubr.f32.mxu1 %v187_v52 }
 0x128   :  { %292 = vmatmul.mubr.f32.gmra.mrb[2].mxu1 %v186_v53 }
 0x1f7   :  { %v413_v54 = vpop.f32.mrb[0].mxu1 }
 0x1f8   :  { %v414_v55 = vpop.f32.mrb[1].mxu1 }
 0x1f9   :  { %v415_v57 = vadd.f32 %v414_v55, %v413_v54 }
 0x1fb   :  { %v313_v58 = vadd.f32 %v415_v57, %v378_v56  ;;  %v416_v59 = vpop.f32.mrb[2].mxu1 }
 0x1fc   :  { %v417_v60 = vpop.f32.mrb[3].mxu1 }
 0x1fd   :  { %v418_v61 = vadd.f32 %v417_v60, %v416_v59  ;;  %v315_v62 = vadd.f32 %v313_v58, %v61_v24 }
 0x1ff   :  { %v314_v63 = vadd.f32 %v418_v61, %v378_v56  ;;  %317 = vadd.xlane.f32.xlu0 %v315_v62 }
 0x201   :  { %v316_v1 = vadd.f32 %v314_v63, %v62_v26 }
 0x203   :  { %319 = vadd.xlane.f32.xlu0 %v316_v1 }
 0x28c   :  { %v318_v2 = vpop.xlane.xlu0 %317 }
 0x28d   :  { %v322_v3 = vmul.f32 0.0078125, %v318_v2 }
 0x28f   :  { %v324_v4 = vsub.f32 %v315_v62, %v322_v3 }
 0x290   :  { %v320_v5 = vpop.xlane.xlu0 %319 }
 0x291   :  { %v323_v6 = vmul.f32 0.0078125, %v320_v5  ;;  %v326_v7 = vmul.f32 %v324_v4, %v324_v4 }
 0x293   :  { %v325_v8 = vsub.f32 %v316_v1, %v323_v6  ;;  %328 = vadd.xlane.f32.xlu1 %v326_v7 }
 0x295   :  { %v327_v9 = vmul.f32 %v325_v8, %v325_v8 }
 0x297   :  { %330 = vadd.xlane.f32.xlu1 %v327_v9 }
 0x320   :  { %v329_v10 = vpop.xlane.xlu1 %328 }
 0x321   :  { %v332_v11 = vmul.f32 0.0078125, %v329_v10 }
 0x323   :  { %v334_v12 = vadd.f32 1e-05, %v332_v11 }
 0x324   :  { %v331_v13 = vpop.xlane.xlu1 %330 }
 0x325   :  { %491 = vrsqrt.f32 %v334_v12  ;;  %v333_v14 = vmul.f32 0.0078125, %v331_v13 }
 0x327   :  { %v335_v15 = vadd.f32 1e-05, %v333_v14 }
 0x329   :  { %493 = vrsqrt.f32 %v335_v15 }
 0x32f   :  { %v492_v16 = vpop.eup %491 }
 0x330   :  { %v338_v18 = vmul.f32 %v492_v16, %v324_v4 }
 0x332   :  { %v347_v20 = vmul.f32 %v379_v17, %v338_v18 }
 0x333   :  { %v494_v21 = vpop.eup %493 }
 0x334   :  { %v339_v22 = vmul.f32 %v494_v21, %v325_v8  ;;  %v356_v23 = vadd.f32 %v380_v19, %v347_v20 }
 0x336   :  { %v348_v24 = vmul.f32 %v379_v17, %v339_v22  ;;  %358 = vst [vmem:[#allocation8] sm:$0xff] %v356_v23 }
 0x338   :  { %v357_v25 = vadd.f32 %v380_v19, %v348_v24 }
 0x33a   :  { %359 = vst [vmem:[#allocation8 + $0x8] sm:$0xff] %v357_v25 }
 0x33b   :  { %550 = shalt.err (!%p547_p6)
}
 0x33c   :  { %s551_s16 = scalar_lea.hbm %s684_s7, 256 }
 0x33d   :  { %p552_p7 = scmp.ne.s32.totalorder %s684_s7, %s551_s16  ;;  %p555_p8 = scmp.lt.u32.totalorder %s551_s16, %s684_s7 }
 0x33f   :  { %p557_p9 = pnand %p555_p8, %p552_p7 }
 0x341   :  { %560 = shalt.err (!%p557_p9)
}
 0x342   :  { %371 = dma.vmem_to_hbm [thread:$0]  %s366_s14, 256, %s684_s7, [#allocation5], %s571_s1, %s571_s1, %s572_s25  }
 0x343   :  { %565 = dma.done.wait [#allocation5], 256  }
 0x344   :  { %566 = vsyncadd [#allocation5], 4294967040 }
 0x345   :  { %375 = vsyncpa [#allocation4], 1 }
 0x346   :  { %376 = vsyncpa [#allocation7], 1 }
 0x347   :  { %377 = vsyncpa [#allocation5], 1 }

</bundles_post_ra>
